<compile_context>
chip_gen: v7x
topology: tpu7x:2x2x1
jax: 0.10.0
libtpu: 0.0.40
codegen_flags: <defaults>
</compile_context>

<pallas_src>
import functools

import jax
import jax.numpy as jnp
from jax import lax
from jax.experimental import pallas as pl
from jax.experimental.pallas import tpu as pltpu


def _attn_kernel(x_ref, wqkv_ref, bqkv_ref, wp_ref, y_ref, *, n_head, head_dim, block_b):
    # x_ref:    (block_b, T, C)  batch rows handled this grid step
    # wqkv_ref: (3C, C)          c_attn weight, torch layout (out, in) -- no transposed copy
    # bqkv_ref: (1, 3C)          c_attn bias as a single broadcast row
    # wp_ref:   (C, C)           fused output projection; row (h*hd + v), col d = w_proj[h, d, v]
    # y_ref:    (block_b, T, C)
    T = x_ref.shape[1]
    C = x_ref.shape[2]

    # Merge the block's batch rows into one (block_b*T, C) slab for the QKV matmul.
    # Layout-free: T == 8 is a multiple of the 8-row sublane tile.
    x2 = x_ref[...].reshape(block_b * T, C)

    # Contract the last dim of both operands (A @ B^T) without an explicit transpose op.
    cdims = (((1,), (1,)), ((), ()))

    # Single fused c_attn projection: (block_b*T, C) x (3C, C)^T -> (block_b*T, 3C),
    # one MXU issue and one bias broadcast-add instead of three of each.
    qkv = lax.dot_general(x2, wqkv_ref[...], cdims, preferred_element_type=jnp.float32)
    qkv = qkv + bqkv_ref[...]

    wp = wp_ref[...]  # (C, C)

    # Static unroll over batch rows and heads (both tiny here); vreg pressure is trivial.
    # Switch to lax.fori_loop(unroll=True) only if block_b * n_head grows.
    for bb in range(block_b):
        r0 = bb * T
        qb = qkv[r0:r0 + T, 0:C]          # (T, C)
        kb = qkv[r0:r0 + T, C:2 * C]      # (T, C)
        vb = qkv[r0:r0 + T, 2 * C:3 * C]  # (T, C)

        heads = []
        for h in range(n_head):
            lo = h * head_dim
            qh = qb[:, lo:lo + head_dim]  # (T, hd)
            kh = kb[:, lo:lo + head_dim]  # (T, hd)
            vh = vb[:, lo:lo + head_dim]  # (T, hd)

            # logits = q @ k^T (no 1/sqrt(d) scaling, matching the module).
            logits = lax.dot_general(qh, kh, cdims, preferred_element_type=jnp.float32)  # (T, T)

            # Numerically-stable softmax; exact divide (stays bit-close to torch).
            m = jnp.max(logits, axis=-1, keepdims=True)
            p = jnp.exp(logits - m)
            denom = jnp.sum(p, axis=-1, keepdims=True)
            w_att = p / denom

            heads.append(jnp.dot(w_att, vh, preferred_element_type=jnp.float32))  # (T, hd)

        # Heads stay in registers; single fused output projection (T, C) @ (C, C).
        o = jnp.concatenate(heads, axis=-1)                                    # (T, C)
        y = jnp.dot(o, wp, preferred_element_type=jnp.float32)                  # (T, C)
        y_ref[bb] = y.astype(y_ref.dtype)


def _pick_block_b(B):
    """Merge batch rows per grid step, but keep >= 2 steps when B >= 2 so v7x's
    second TensorCore is not idled (v5e/v6e have one TC and don't care)."""
    if B <= 1:
        return 1
    bb = max(B // 2, 1)
    while bb > 1 and B % bb != 0:
        bb -= 1
    return bb


def attention_hproj(x, w_attn, b_attn, w_proj, *, n_head, block_b=None):
    """x: (B, T, C); w_attn: (3C, C) torch Linear layout; b_attn: (3C,);
    w_proj: (n_head, C, head_dim) -- the 'hdv' tensor used by the forward einsum."""
    B, T, C = x.shape
    head_dim = C // n_head
    if block_b is None:
        block_b = _pick_block_b(B)
    assert B % block_b == 0, (B, block_b)

    # Tiny (O(C^2)) wrapper-side reshapes; the big (3C, C) weight is passed untouched.
    b_row = b_attn.reshape(1, 3 * C)
    # wp2d[h*hd + v, d] = w_proj[h, d, v]  -> single fused projection operand.
    wp2d = jnp.transpose(w_proj, (0, 2, 1)).reshape(C, C)

    kernel = functools.partial(_attn_kernel, n_head=n_head, head_dim=head_dim,
                               block_b=block_b)

    return pl.pallas_call(
        kernel,
        out_shape=jax.ShapeDtypeStruct((B, T, C), x.dtype),
        grid_spec=pltpu.PrefetchScalarGridSpec(
            num_scalar_prefetch=0,
            grid=(B // block_b,),
            in_specs=[
                pl.BlockSpec((block_b, T, C), lambda i: (i, 0, 0)),   # x, block_b rows per step
                pl.BlockSpec((3 * C, C), lambda i: (0, 0)),           # c_attn weight (torch layout)
                pl.BlockSpec((1, 3 * C), lambda i: (0, 0)),           # c_attn bias (single row)
                pl.BlockSpec((C, C), lambda i: (0, 0)),               # fused output projection
            ],
            out_specs=pl.BlockSpec((block_b, T, C), lambda i: (i, 0, 0)),
        ),
        compiler_params=pltpu.CompilerParams(
            dimension_semantics=("parallel",),        # megacore-shard the batch-block axis
            vmem_limit_bytes=32 * 1024 * 1024,        # explicit budget (fits v5e/v6e/v7x)
        ),
    )(x, w_attn, b_row, wp2d)


def attention_hproj_ref(x, w_attn, b_attn, w_proj, *, n_head):
    """Pure-JAX reference mirroring the PyTorch forward (HIGHEST matmul precision)."""
    B, T, C = x.shape
    hd = C // n_head
    hp = jax.lax.Precision.HIGHEST
    qkv = jnp.einsum("btc,oc->bto", x, w_attn, precision=hp) + b_attn
    q, k, v = jnp.split(qkv, 3, axis=2)
    q = q.reshape(B, T, n_head, hd).transpose(0, 2, 1, 3)
    k = k.reshape(B, T, n_head, hd).transpose(0, 2, 1, 3)
    v = v.reshape(B, T, n_head, hd).transpose(0, 2, 1, 3)
    logits = jnp.einsum("bhnk,bhmk->bhnm", q, k, precision=hp)        # no scaling
    weights = jax.nn.softmax(logits, axis=-1)                         # dropout = 0
    O = jnp.einsum("bhnm,bhmv->bhnv", weights, v, precision=hp)
    Y = jnp.einsum("bhnv,hdv->bnd", O, w_proj, precision=hp)
    return Y


if __name__ == "__main__":
    # config: n_embd=32, n_head=4, bias=True, dropout=0.0, model_type != 'GPT' (no causal mask)
    B, T, C, n_head = 2, 8, 32, 4
    head_dim = C // n_head

    key = jax.random.PRNGKey(0)
    kx, kw1, kb1, kw2 = jax.random.split(key, 4)

    x = jax.random.normal(kx, (B, T, C), dtype=jnp.float32)
    w_attn = jax.random.normal(kw1, (3 * C, C), dtype=jnp.float32) * (1.0 / jnp.sqrt(C))
    b_attn = jax.random.normal(kb1, (3 * C,), dtype=jnp.float32) * 0.02
    # c_proj.weight used as an (n_head, n_embd, head_dim) 'hdv' tensor in the forward einsum.
    w_proj = jax.random.normal(kw2, (n_head, C, head_dim), dtype=jnp.float32) * (1.0 / jnp.sqrt(C))

    y = attention_hproj(x, w_attn, b_attn, w_proj, n_head=n_head)
    y = jax.block_until_ready(y)

    y_ref = attention_hproj_ref(x, w_attn, b_attn, w_proj, n_head=n_head)
    assert y.shape == (B, T, C)
    assert jnp.allclose(y, y_ref, atol=2e-3, rtol=2e-3), (
        f"max err = {jnp.max(jnp.abs(y - y_ref))}"
    )
    print("KERNEL_OK")
</pallas_src>

<mosaic_0001>
module attributes {stable_mosaic.version = 11 : i64} {
  func.func @_attn_kernel(%arg0: i32, %arg1: memref<1x8x32xf32, #tpu.memory_space<vmem>>, %arg2: memref<96x32xf32, #tpu.memory_space<vmem>>, %arg3: memref<1x96xf32, #tpu.memory_space<vmem>>, %arg4: memref<32x32xf32, #tpu.memory_space<vmem>>, %arg5: memref<1x8x32xf32, #tpu.memory_space<vmem>>) attributes {dimension_semantics = [#tpu.dimension_semantics<parallel>], iteration_bounds = array<i64: 2>, scalar_prefetch = 0 : i64, scratch_operands = 0 : i64, tpu.core_type = #tpu.core_type<tc>, window_params = [{transform_indices = @transform_0, window_bounds = array<i64: 1, 8, 32>}, {pipeline_mode = #tpu.pipeline_mode<synchronous>, transform_indices = @transform_1, window_bounds = array<i64: 96, 32>}, {pipeline_mode = #tpu.pipeline_mode<synchronous>, transform_indices = @transform_2, window_bounds = array<i64: 1, 96>}, {pipeline_mode = #tpu.pipeline_mode<synchronous>, transform_indices = @transform_3, window_bounds = array<i64: 32, 32>}, {transform_indices = @transform_4, window_bounds = array<i64: 1, 8, 32>}]} {
    %c0 = arith.constant 0 : index
    %c0_0 = arith.constant 0 : index
    %c0_1 = arith.constant 0 : index
    %0 = vector.load %arg1[%c0, %c0_0, %c0_1] : memref<1x8x32xf32, #tpu.memory_space<vmem>>, vector<1x8x32xf32>
    %1 = vector.shape_cast %0 : vector<1x8x32xf32> to vector<8x32xf32>
    %c0_2 = arith.constant 0 : index
    %c0_3 = arith.constant 0 : index
    %2 = vector.load %arg2[%c0_2, %c0_3] : memref<96x32xf32, #tpu.memory_space<vmem>>, vector<96x32xf32>
    %cst = arith.constant dense<0.000000e+00> : vector<8x96xf32>
    %3 = tpu.matmul %1, %2, %cst {dimension_numbers = #tpu.dot_dimension_numbers<[1], [1], [0], [0], [0, 0, 1, 0], [], []>} : vector<8x32xf32>, vector<96x32xf32>, vector<8x96xf32> -> vector<8x96xf32>
    %c0_4 = arith.constant 0 : index
    %c0_5 = arith.constant 0 : index
    %4 = vector.load %arg3[%c0_4, %c0_5] : memref<1x96xf32, #tpu.memory_space<vmem>>, vector<1x96xf32>
    %5 = vector.broadcast %4 : vector<1x96xf32> to vector<8x96xf32>
    %6 = arith.addf %3, %5 : vector<8x96xf32>
    %c0_6 = arith.constant 0 : index
    %c0_7 = arith.constant 0 : index
    %7 = vector.load %arg4[%c0_6, %c0_7] : memref<32x32xf32, #tpu.memory_space<vmem>>, vector<32x32xf32>
    %8 = vector.extract_strided_slice %6 {offsets = [0, 0], sizes = [8, 32], strides = [1, 1]} : vector<8x96xf32> to vector<8x32xf32>
    %9 = vector.extract_strided_slice %6 {offsets = [0, 32], sizes = [8, 32], strides = [1, 1]} : vector<8x96xf32> to vector<8x32xf32>
    %10 = vector.extract_strided_slice %6 {offsets = [0, 64], sizes = [8, 32], strides = [1, 1]} : vector<8x96xf32> to vector<8x32xf32>
    %11 = vector.extract_strided_slice %8 {offsets = [0, 0], sizes = [8, 8], strides = [1, 1]} : vector<8x32xf32> to vector<8x8xf32>
    %12 = vector.extract_strided_slice %9 {offsets = [0, 0], sizes = [8, 8], strides = [1, 1]} : vector<8x32xf32> to vector<8x8xf32>
    %13 = vector.extract_strided_slice %10 {offsets = [0, 0], sizes = [8, 8], strides = [1, 1]} : vector<8x32xf32> to vector<8x8xf32>
    %cst_8 = arith.constant dense<0.000000e+00> : vector<8x8xf32>
    %14 = tpu.matmul %11, %12, %cst_8 {dimension_numbers = #tpu.dot_dimension_numbers<[1], [1], [0], [0], [0, 0, 1, 0], [], []>} : vector<8x8xf32>, vector<8x8xf32>, vector<8x8xf32> -> vector<8x8xf32>
    %cst_9 = arith.constant dense<0xFF800000> : vector<8xf32>
    %15 = vector.multi_reduction <maximumf>, %14, %cst_9 [1] : vector<8x8xf32> to vector<8xf32>
    %16 = vector.shape_cast %15 : vector<8xf32> to vector<8x1xf32>
    %17 = vector.broadcast %16 : vector<8x1xf32> to vector<8x8xf32>
    %18 = arith.subf %14, %17 : vector<8x8xf32>
    %19 = math.exp %18 : vector<8x8xf32>
    %cst_10 = arith.constant dense<0.000000e+00> : vector<8xf32>
    %20 = vector.multi_reduction <add>, %19, %cst_10 [1] : vector<8x8xf32> to vector<8xf32>
    %21 = vector.shape_cast %20 : vector<8xf32> to vector<8x1xf32>
    %22 = vector.broadcast %21 : vector<8x1xf32> to vector<8x8xf32>
    %23 = arith.divf %19, %22 : vector<8x8xf32>
    %cst_11 = arith.constant dense<0.000000e+00> : vector<8x8xf32>
    %24 = tpu.matmul %23, %13, %cst_11 {dimension_numbers = #tpu.dot_dimension_numbers<[1], [0], [0], [1], [0, 0, 1, 1], [], []>} : vector<8x8xf32>, vector<8x8xf32>, vector<8x8xf32> -> vector<8x8xf32>
    %25 = vector.extract_strided_slice %8 {offsets = [0, 8], sizes = [8, 8], strides = [1, 1]} : vector<8x32xf32> to vector<8x8xf32>
    %26 = vector.extract_strided_slice %9 {offsets = [0, 8], sizes = [8, 8], strides = [1, 1]} : vector<8x32xf32> to vector<8x8xf32>
    %27 = vector.extract_strided_slice %10 {offsets = [0, 8], sizes = [8, 8], strides = [1, 1]} : vector<8x32xf32> to vector<8x8xf32>
    %cst_12 = arith.constant dense<0.000000e+00> : vector<8x8xf32>
    %28 = tpu.matmul %25, %26, %cst_12 {dimension_numbers = #tpu.dot_dimension_numbers<[1], [1], [0], [0], [0, 0, 1, 0], [], []>} : vector<8x8xf32>, vector<8x8xf32>, vector<8x8xf32> -> vector<8x8xf32>
    %cst_13 = arith.constant dense<0xFF800000> : vector<8xf32>
    %29 = vector.multi_reduction <maximumf>, %28, %cst_13 [1] : vector<8x8xf32> to vector<8xf32>
    %30 = vector.shape_cast %29 : vector<8xf32> to vector<8x1xf32>
    %31 = vector.broadcast %30 : vector<8x1xf32> to vector<8x8xf32>
    %32 = arith.subf %28, %31 : vector<8x8xf32>
    %33 = math.exp %32 : vector<8x8xf32>
    %cst_14 = arith.constant dense<0.000000e+00> : vector<8xf32>
    %34 = vector.multi_reduction <add>, %33, %cst_14 [1] : vector<8x8xf32> to vector<8xf32>
    %35 = vector.shape_cast %34 : vector<8xf32> to vector<8x1xf32>
    %36 = vector.broadcast %35 : vector<8x1xf32> to vector<8x8xf32>
    %37 = arith.divf %33, %36 : vector<8x8xf32>
    %cst_15 = arith.constant dense<0.000000e+00> : vector<8x8xf32>
    %38 = tpu.matmul %37, %27, %cst_15 {dimension_numbers = #tpu.dot_dimension_numbers<[1], [0], [0], [1], [0, 0, 1, 1], [], []>} : vector<8x8xf32>, vector<8x8xf32>, vector<8x8xf32> -> vector<8x8xf32>
    %39 = vector.extract_strided_slice %8 {offsets = [0, 16], sizes = [8, 8], strides = [1, 1]} : vector<8x32xf32> to vector<8x8xf32>
    %40 = vector.extract_strided_slice %9 {offsets = [0, 16], sizes = [8, 8], strides = [1, 1]} : vector<8x32xf32> to vector<8x8xf32>
    %41 = vector.extract_strided_slice %10 {offsets = [0, 16], sizes = [8, 8], strides = [1, 1]} : vector<8x32xf32> to vector<8x8xf32>
    %cst_16 = arith.constant dense<0.000000e+00> : vector<8x8xf32>
    %42 = tpu.matmul %39, %40, %cst_16 {dimension_numbers = #tpu.dot_dimension_numbers<[1], [1], [0], [0], [0, 0, 1, 0], [], []>} : vector<8x8xf32>, vector<8x8xf32>, vector<8x8xf32> -> vector<8x8xf32>
    %cst_17 = arith.constant dense<0xFF800000> : vector<8xf32>
    %43 = vector.multi_reduction <maximumf>, %42, %cst_17 [1] : vector<8x8xf32> to vector<8xf32>
    %44 = vector.shape_cast %43 : vector<8xf32> to vector<8x1xf32>
    %45 = vector.broadcast %44 : vector<8x1xf32> to vector<8x8xf32>
    %46 = arith.subf %42, %45 : vector<8x8xf32>
    %47 = math.exp %46 : vector<8x8xf32>
    %cst_18 = arith.constant dense<0.000000e+00> : vector<8xf32>
    %48 = vector.multi_reduction <add>, %47, %cst_18 [1] : vector<8x8xf32> to vector<8xf32>
    %49 = vector.shape_cast %48 : vector<8xf32> to vector<8x1xf32>
    %50 = vector.broadcast %49 : vector<8x1xf32> to vector<8x8xf32>
    %51 = arith.divf %47, %50 : vector<8x8xf32>
    %cst_19 = arith.constant dense<0.000000e+00> : vector<8x8xf32>
    %52 = tpu.matmul %51, %41, %cst_19 {dimension_numbers = #tpu.dot_dimension_numbers<[1], [0], [0], [1], [0, 0, 1, 1], [], []>} : vector<8x8xf32>, vector<8x8xf32>, vector<8x8xf32> -> vector<8x8xf32>
    %53 = vector.extract_strided_slice %8 {offsets = [0, 24], sizes = [8, 8], strides = [1, 1]} : vector<8x32xf32> to vector<8x8xf32>
    %54 = vector.extract_strided_slice %9 {offsets = [0, 24], sizes = [8, 8], strides = [1, 1]} : vector<8x32xf32> to vector<8x8xf32>
    %55 = vector.extract_strided_slice %10 {offsets = [0, 24], sizes = [8, 8], strides = [1, 1]} : vector<8x32xf32> to vector<8x8xf32>
    %cst_20 = arith.constant dense<0.000000e+00> : vector<8x8xf32>
    %56 = tpu.matmul %53, %54, %cst_20 {dimension_numbers = #tpu.dot_dimension_numbers<[1], [1], [0], [0], [0, 0, 1, 0], [], []>} : vector<8x8xf32>, vector<8x8xf32>, vector<8x8xf32> -> vector<8x8xf32>
    %cst_21 = arith.constant dense<0xFF800000> : vector<8xf32>
    %57 = vector.multi_reduction <maximumf>, %56, %cst_21 [1] : vector<8x8xf32> to vector<8xf32>
    %58 = vector.shape_cast %57 : vector<8xf32> to vector<8x1xf32>
    %59 = vector.broadcast %58 : vector<8x1xf32> to vector<8x8xf32>
    %60 = arith.subf %56, %59 : vector<8x8xf32>
    %61 = math.exp %60 : vector<8x8xf32>
    %cst_22 = arith.constant dense<0.000000e+00> : vector<8xf32>
    %62 = vector.multi_reduction <add>, %61, %cst_22 [1] : vector<8x8xf32> to vector<8xf32>
    %63 = vector.shape_cast %62 : vector<8xf32> to vector<8x1xf32>
    %64 = vector.broadcast %63 : vector<8x1xf32> to vector<8x8xf32>
    %65 = arith.divf %61, %64 : vector<8x8xf32>
    %cst_23 = arith.constant dense<0.000000e+00> : vector<8x8xf32>
    %66 = tpu.matmul %65, %55, %cst_23 {dimension_numbers = #tpu.dot_dimension_numbers<[1], [0], [0], [1], [0, 0, 1, 1], [], []>} : vector<8x8xf32>, vector<8x8xf32>, vector<8x8xf32> -> vector<8x8xf32>
    %67 = tpu.concatenate %24, %38, %52, %66 in 1 : vector<8x8xf32>, vector<8x8xf32>, vector<8x8xf32>, vector<8x8xf32> -> vector<8x32xf32>
    %cst_24 = arith.constant dense<0.000000e+00> : vector<8x32xf32>
    %68 = tpu.matmul %67, %7, %cst_24 {dimension_numbers = #tpu.dot_dimension_numbers<[1], [0], [0], [1], [0, 0, 1, 1], [], []>} : vector<8x32xf32>, vector<32x32xf32>, vector<8x32xf32> -> vector<8x32xf32>
    %c0_25 = arith.constant 0 : index
    %c0_26 = arith.constant 0 : index
    %c0_27 = arith.constant 0 : index
    %69 = vector.load %arg5[%c0_25, %c0_26, %c0_27] : memref<1x8x32xf32, #tpu.memory_space<vmem>>, vector<1x8x32xf32>
    %70 = vector.shape_cast %69 : vector<1x8x32xf32> to vector<8x32xf32>
    %71 = vector.shape_cast %68 : vector<8x32xf32> to vector<1x8x32xf32>
    tpu.vector_store %arg5[%c0_25, %c0_26, %c0_27], %71 {strides = array<i32>} : memref<1x8x32xf32, #tpu.memory_space<vmem>>, vector<1x8x32xf32>,
    return
  }
  func.func @transform_0(%arg0: i32) -> (i32, i32, i32) {
    %c0_i32 = arith.constant 0 : i32
    %c0_i32_0 = arith.constant 0 : i32
    %c0_i32_1 = arith.constant 0 : i32
    return %arg0, %c0_i32, %c0_i32_0 : i32, i32, i32
  }
  func.func @transform_1(%arg0: i32) -> (i32, i32) {
    %c0_i32 = arith.constant 0 : i32
    %c0_i32_0 = arith.constant 0 : i32
    %c0_i32_1 = arith.constant 0 : i32
    return %c0_i32, %c0_i32_0 : i32, i32
  }
  func.func @transform_2(%arg0: i32) -> (i32, i32) {
    %c0_i32 = arith.constant 0 : i32
    %c0_i32_0 = arith.constant 0 : i32
    %c0_i32_1 = arith.constant 0 : i32
    return %c0_i32, %c0_i32_0 : i32, i32
  }
  func.func @transform_3(%arg0: i32) -> (i32, i32) {
    %c0_i32 = arith.constant 0 : i32
    %c0_i32_0 = arith.constant 0 : i32
    %c0_i32_1 = arith.constant 0 : i32
    return %c0_i32, %c0_i32_0 : i32, i32
  }
  func.func @transform_4(%arg0: i32) -> (i32, i32, i32) {
    %c0_i32 = arith.constant 0 : i32
    %c0_i32_0 = arith.constant 0 : i32
    %c0_i32_1 = arith.constant 0 : i32
    return %arg0, %c0_i32, %c0_i32_0 : i32, i32, i32
  }
}

</mosaic_0001>

<bundles_post_ra>
// kernel: tpu_custom_call.1
= control target key start
LH: loop header
LB: loop body
LE: loop exit
PB: predicated region body
PF: predicated region fallthrough
CT: control target
= control target key end

     0   :  { %9 = vsyncpa [#allocation3], 0  ;;  %s1755_s0 = inlined_call_operand.vmem [shape: f32[2,8,32], index: 0, kind: input, shape index: {}]   ;;  %s1756_s1 = inlined_call_operand.vmem [shape: f32[96,32], index: 1, kind: input, shape index: {}]   ;;  %s1757_s2 = inlined_call_operand.vmem [shape: f32[1,96], index: 2, kind: input, shape index: {}]   ;;  %s1758_s3 = inlined_call_operand.vmem [shape: f32[32,32], index: 3, kind: input, shape index: {}]   ;;  %s1759_s4 = inlined_call_operand.hbm [shape: f32[2,8,32], index: 4, kind: output, shape index: {}]  }
   0x1   :  { %11 = vsyncpa [#allocation3 + $0x1], 0  ;;  %s1509_s15 = smov 0   ;;  %s1511_s16 = smov 0  }
   0x2   :  { %s1513_s17 = smov 0   ;;  %s1515_s18 = smov 0  }
   0x3 LB: > { %s1530_s19 = sadd.s32 4294967295, %s1464_s18   ;;  %s1151_s20 = sadd.s32 4294967294, %s1464_s18   ;;  %s1464_s18 = sphi %s1515_s18, %s1767_s18   ;;  %s1460_s17 = sphi %s1513_s17, %s1766_s17   ;;  %s1456_s16 = sphi %s1511_s16, %s1765_s16   ;;  %s1452_s15 = sphi %s1509_s15, %s1764_s15  }
   0x4   : > { %s1534_s21 = sadd.s32 1, %s1464_s18   ;;  %s113_s22 = sadd.s32 1, %s1460_s17 }
   0x5   : > { %s110_s23 = ssub.s32 %s1464_s18, %s1534_s21  ;;  %p123_p0 = scmp.ne.s32.totalorder %s1460_s17, %s1456_s16 }
   0x6   : > { %p111_p1 = scmp.eq.s32.totalorder %s110_s23, 0  ;;  %p124_p2 = scmp.eq.s32.totalorder %s1530_s19, 1 }
   0x7   : > { %p129_p3 = scmp.ne.s32.totalorder %s1456_s16, %s1452_s15  ;;  %p130_p4 = scmp.eq.s32.totalorder %s1151_s20, 1 }
   0x8   : > { %s1545_s24 = scalar_select %p111_p1, %s1460_s17, %s113_s22  }
   0x9   : > { %p1547_p5 = por %p124_p2, %p123_p0  ;;  %p1551_p6 = por %p130_p4, %p129_p3 }
   0xa   : > { %p1154_p7 = scmp.ge.s32.totalorder %s1464_s18, 1  ;;  %p164_p8 = scmp.lt.s32.totalorder %s1464_s18, 3 }
   0xc   : > { %p165_p9 = pnand %p1154_p7, %p164_p8 }
   0xd   : > { %v194_v0 = vld [vmem:[%s1756_s1] sm:$0xff] (!%p165_p9)  ;;  %v195_v1 = vld [vmem:[%s1756_s1 + $0x8] sm:$0xff] (!%p165_p9)  ;;  %vm213_vm0 = vcmask (!%p165_p9), 261120   ;;  %v1466_v2 = vmov (!%p165_p9), 0.0|0.0   ;;  %vm1467_vm2 = vmmov (!%p165_p9), 0   ;;  %v1468_v5 = vmov (!%p165_p9), 0.0  }
   0xe   : > { %168 = sbr.rel (%p165_p9) target bundleno = 3065 (0xbf9), region = 36  ;;  %1300 = vmatprep.subr.bf16.mxu0 (!%p165_p9), %v1466_v2  ;;  %v1301_v3 = vpack.c.bf16 (!%p165_p9), %v195_v1, %v194_v0  ;;  %vm1566_vm1 = vmpackc.low (!%p165_p9), %vm213_vm0, %vm213_vm0  ;;  %1246 = vmatprep.mubr.msk.f32.mxu0 (!%p165_p9), %vm1467_vm2, %v1468_v5  ;;  %v196_v6 = vld [vmem:[%s1756_s1 + $0x10] sm:$0xff] (!%p165_p9)  ;;  %v197_v7 = vld [vmem:[%s1756_s1 + $0x18] sm:$0xff] (!%p165_p9)  ;;  %p189_p10 = scmp.lt.s32.totalorder (!%p165_p9), %s1530_s19, 1  ;;  %vm330_vm3 = vcmask (!%p165_p9), 64512   ;;  %vm1000_vm4 = vcmask (!%p165_p9), 130048  }
   0xf   : > { %1249 = vmatprep.subr.mxu1 (!%p165_p9), %v1468_v5  ;;  %1251 = vmatprep.mubr.msk.f32.mxu1 (!%p165_p9), %vm1467_vm2, %v1468_v5  ;;  %v1305_v8 = vpack.c.bf16 (!%p165_p9), %v197_v7, %v196_v6  ;;  %v198_v9 = vld [vmem:[%s1756_s1 + $0x20] sm:$0xff] (!%p165_p9)  ;;  %v199_v10 = vld [vmem:[%s1756_s1 + $0x28] sm:$0xff] (!%p165_p9)  ;;  %v200_v12 = vld [vmem:[%s1756_s1 + $0x30] sm:$0xff] (!%p165_p9)  ;;  %s1469_s20 = smov (!%p165_p9), 64   ;;  %s1470_s22 = smov (!%p165_p9), 96   ;;  %vm1002_vm5 = vcmask (!%p165_p9), 195584  }
  0x10   : > { %1303 = vmatpush3.bf16.xpose.msk.msra.mxu0 (!%p165_p9), %vm1566_vm1, %v1301_v3  ;;  %v1309_v11 = vpack.c.bf16 (!%p165_p9), %v199_v10, %v198_v9  ;;  %v201_v13 = vld [vmem:[%s1756_s1 + $0x38] sm:$0xff] (!%p165_p9)  ;;  %v202_v15 = vld [vmem:[%s1756_s1 + $0x40] sm:$0xff] (!%p165_p9)  ;;  %v203_v16 = vld [vmem:[%s1756_s1 + $0x48] sm:$0xff] (!%p165_p9)  ;;  %s1471_s23 = smov (!%p165_p9), 88   ;;  %s1472_s27 = smov (!%p165_p9), 56  }
  0x11   : > { %1304 = vmatprep.subr.bf16.mxu0 (!%p165_p9), %v1466_v2  ;;  %v1313_v14 = vpack.c.bf16 (!%p165_p9), %v201_v13, %v200_v12  ;;  %v1317_v17 = vpack.c.bf16 (!%p165_p9), %v203_v16, %v202_v15  ;;  %v204_v18 = vld [vmem:[%s1756_s1 + $0x50] sm:$0xff] (!%p165_p9)  ;;  %v205_v19 = vld [vmem:[%s1756_s1 + $0x58] sm:$0xff] (!%p165_p9)  ;;  %v1157_v22 = vld [vmem:[%s1757_s2] ss:$0 sm:$0xff] (!%p165_p9)  ;;  %s1473_s28 = smov (!%p165_p9), 80   ;;  %s1474_s29 = smov (!%p165_p9), 120  }
  0x12   : > { %v1321_v20 = vpack.c.bf16 (!%p165_p9), %v205_v19, %v204_v18  ;;  %s1475_s30 = smov (!%p165_p9), 112   ;;  %s1476_s5 = smov (!%p165_p9), 48  }
  0x13   : > { %s1477_s6 = smov (!%p165_p9), 72   ;;  %s1478_s7 = smov (!%p165_p9), 104  }
  0x14   : > { %s1481_s10 = smov (!%p165_p9), 16  }
  0x15   : > { %s190_s8 = scalar_select %p189_p10, %s1530_s19, 1 }
  0x17   : > { %s1156_s9 = sshll.u32 %s190_s8, 3  ;;  %s1479_s8 = smov 40  }
  0x18   : > { %1307 = vmatpush3.bf16.xpose.msk.msra.mxu0 %vm1566_vm1, %v1305_v8  ;;  %s192_s12 = scalar_lea.vmem %s1755_s0, %s1156_s9  ;;  %s1480_s9 = smov 8  }
  0x19   : > { %1308 = vmatprep.subr.bf16.mxu0 %v1466_v2  ;;  %v193_v21 = vld [vmem:[%s192_s12] sm:$0xff] }
  0x20   : > { %1311 = vmatpush3.bf16.xpose.msk.msra.mxu0 %vm1566_vm1, %v1309_v11 }
  0x21   : > { %1312 = vmatprep.subr.bf16.mxu0 %v1466_v2 }
  0x28   : > { %1315 = vmatpush3.bf16.xpose.msk.msra.mxu0 %vm1566_vm1, %v1313_v14 }
  0x29   : > { %1316 = vmatprep.subr.bf16.mxu0 %v1466_v2 }
  0x30   : > { %1319 = vmatpush3.bf16.xpose.msk.msra.mxu0 %vm1566_vm1, %v1317_v17 }
  0x31   : > { %1320 = vmatprep.subr.bf16.mxu0 %v1466_v2 }
  0x38   : > { %1323 = vmatpush3.bf16.xpose.msk.msra.mxu0 %vm1566_vm1, %v1321_v20 }
  0x3f   : > { %1247 = vmatmul.mubr.msk.f32.vlgmr.msra.gmra.mrb[0].mxu0 %vm213_vm0, %v193_v21 }
 0x112   : > { %v319_v23 = vpop.f32.mrb[0].mxu0 }
 0x113   : > { %v1631_v24 = vadd.f32 %v1157_v22, %v319_v23  ;;  %v1248_v25 = vpop.f32.mrb[1].mxu0 }
 0x115   : > { %416 = vrot.lane.b32.xlu1 %v1631_v24, %s1469_s20  ;;  %328 = vrot.lane.b32.xlu0 %v1631_v24, %s1470_s22 }
 0x119   : > { %494 = vrot.lane.b32.xlu1 %v1631_v24, %s1471_s23 }
 0x187   : > { %v329_v26 = vpop.permute.xlu0 %328  ;;  %v417_v27 = vpop.permute.xlu1 %416 }
 0x188   : > { %1250 = vmatpush3.xpose.msk.msra.mxu1 %vm330_vm3, %v329_v26  ;;  %v324_v26 = vld [vmem:[%s1758_s3 + $0x8] sm:$0xff] }
 0x189   : > { %1254 = vmatprep.subr.mxu1 %v1468_v5 }
 0x18b   : > { %1252 = vmatmul.mubr.msk.f32.vlgmr.msra.gmra.mrb[0].mxu1 %vm330_vm3, %v1631_v24  ;;  %v495_v36 = vpop.permute.xlu1 %494 }
 0x18c   : > { %1255 = vmatpush3.msra.mxu1 %v417_v27  ;;  %1256 = vmatprep.mubr.msk.f32.mxu1 %vm1467_vm2, %v1468_v5  ;;  %v325_v27 = vld [vmem:[%s1758_s3 + $0x10] sm:$0xff] }
 0x18d   : > { %1259 = vmatprep.subr.mxu1 %v1468_v5 }
 0x25e   : > { %v401_v28 = vpop.f32.mrb[0].mxu1 }
 0x25f   : > { %v1253_v29 = vpop.f32.mrb[1].mxu1  ;;  %v405_v30 = vsel %vm330_vm3, %v401_v28, -inf }
 0x260   : > { %406 = vmax.xlane.f32.xlu0 %v405_v30  ;;  %v326_v29 = vld [vmem:[%s1758_s3 + $0x18] sm:$0xff] }
 0x261   : > { %v1328_v30 = vpack.c.bf16 %v326_v29, %v325_v27 }
 0x276   : > { %581 = vrot.lane.b32.xlu0 %v1631_v24, %s1472_s27 }
 0x27a   : > { %659 = vrot.lane.b32.xlu0 %v1631_v24, %s1473_s28  ;;  %s1482_s28 = smov 24  }
 0x2ed   : > { %v407_v31 = vpop.xlane.xlu0 %406 }
 0x2ee   : > { %v408_v32 = vsub.f32 %v401_v28, %v407_v31 }
 0x2f0   : > { %v409_v33 = vmul.f32 1.442695, %v408_v32 }
 0x2f1   : > { %v582_v41 = vpop.permute.xlu0 %581 }
 0x2f2   : > { %1386 = vpow2.f32 %v409_v33 }
 0x2f5   : > { %v660_v52 = vpop.permute.xlu0 %659 }
 0x2fc   : > { %v1387_v34 = vpop.eup %1386 }
 0x2fd   : > { %v411_v35 = vsel %vm330_vm3, %v1387_v34, 0.0 }
 0x2fe   : > { %412 = vadd.xlane.f32.xlu1 %v411_v35 }
 0x30f   : > { %492 = vrot.lane.b32.xlu1 %v1631_v24, %s1474_s29  ;;  %s186_s29 = sand.u32 1, %s1456_s16  }
 0x310   : > { %s1079_s11 = scalar_lea.sflag [#allocation3], %s186_s29 }
 0x38b   : > { %v413_v37 = vpop.xlane.xlu1 %412 }
 0x38c   : > { %1388 = vrcp.f32 %v413_v37 }
 0x38f   : > { %v493_v40 = vpop.permute.xlu1 %492 }
 0x396   : > { %v1389_v38 = vpop.eup %1388 }
 0x397   : > { %v415_v39 = vmul.f32 %v1389_v38, %v1387_v34 }
 0x399   : > { %1257 = vmatmul.mubr.msk.f32.vlgmr.msra.gmra.mrb[2].mxu1 %vm330_vm3, %v415_v39 }
 0x39a   : > { %1260 = vmatpush3.xpose.msk.msra.mxu1 %vm330_vm3, %v495_v36  ;;  %1261 = vmatprep.mubr.msk.f32.mxu1 %vm1467_vm2, %v1468_v5 }
 0x39b   : > { %1264 = vmatprep.subr.mxu1 %v1468_v5 }
 0x39d   : > { %1262 = vmatmul.mubr.msk.f32.vlgmr.msra.gmra.mrb[4].mxu1 %vm330_vm3, %v493_v40 }
 0x39e   : > { %1265 = vmatpush3.msra.mxu1 %v582_v41  ;;  %1266 = vmatprep.mubr.msk.f32.mxu1 %vm1467_vm2, %v1468_v5 }
 0x39f   : > { %1269 = vmatprep.subr.mxu1 %v1468_v5 }
 0x46c   : > { %v1657_v42 = vpop.f32.mrb[2].mxu1 }
 0x46d   : > { %v1258_v43 = vpop.f32.mrb[3].mxu1 }
 0x470   : > { %v566_v44 = vpop.f32.mrb[4].mxu1 }
 0x471   : > { %v1263_v45 = vpop.f32.mrb[5].mxu1  ;;  %v570_v46 = vsel %vm330_vm3, %v566_v44, -inf }
 0x472   : > { %571 = vmax.xlane.f32.xlu1 %v570_v46 }
 0x4ff   : > { %v572_v47 = vpop.xlane.xlu1 %571 }
 0x500   : > { %v573_v48 = vsub.f32 %v566_v44, %v572_v47 }
 0x502   : > { %v574_v49 = vmul.f32 1.442695, %v573_v48 }
 0x504   : > { %1390 = vpow2.f32 %v574_v49 }
 0x50e   : > { %v1391_v50 = vpop.eup %1390 }
 0x50f   : > { %v576_v51 = vsel %vm330_vm3, %v1391_v50, 0.0 }
 0x510   : > { %577 = vadd.xlane.f32.xlu0 %v576_v51 }
 0x526   : > { %657 = vrot.lane.b32.xlu0 %v1631_v24, %s1475_s30  ;;  %s1155_s30 = sshll.u32 %s186_s29, 3 }
 0x59d   : > { %v578_v53 = vpop.xlane.xlu0 %577 }
 0x59e   : > { %1392 = vrcp.f32 %v578_v53 }
 0x5a1   : > { %v658_v56 = vpop.permute.xlu0 %657 }
 0x5a8   : > { %v1393_v54 = vpop.eup %1392 }
 0x5a9   : > { %v580_v55 = vmul.f32 %v1393_v54, %v1391_v50 }
 0x5ab   : > { %1267 = vmatmul.mubr.msk.f32.vlgmr.msra.gmra.mrb[6].mxu1 %vm330_vm3, %v580_v55 }
 0x5ac   : > { %1270 = vmatpush3.xpose.msk.msra.mxu1 %vm330_vm3, %v660_v52  ;;  %1271 = vmatprep.mubr.msk.f32.mxu1 %vm1467_vm2, %v1468_v5 }
 0x5ad   : > { %1274 = vmatprep.subr.mxu1 %v1468_v5 }
 0x5af   : > { %1272 = vmatmul.mubr.msk.f32.vlgmr.msra.gmra.mrb[8].mxu1 %vm330_vm3, %v658_v56 }
 0x5b0   : > { %1276 = vmatprep.mubr.msk.f32.mxu1 %vm1467_vm2, %v1468_v5 }
 0x67e   : > { %v653_v57 = vpop.f32.mrb[6].mxu1 }
 0x67f   : > { %v1268_v58 = vpop.f32.mrb[7].mxu1 }
 0x682   : > { %v731_v59 = vpop.f32.mrb[8].mxu1 }
 0x683   : > { %v1273_v60 = vpop.f32.mrb[9].mxu1  ;;  %v735_v61 = vsel %vm330_vm3, %v731_v59, -inf }
 0x684   : > { %736 = vmax.xlane.f32.xlu1 %v735_v61 }
 0x695   : > { %746 = vrot.lane.b32.xlu1 %v1631_v24, %s1476_s5  ;;  %s1185_s5 = sshll.u32 %s1530_s19, 7  ;;  %s1483_s19 = smov [#allocation2]  }
 0x696   : > { %s1406_s13 = sshll.u32 %s1483_s19, 4  ;;  %s1407_s13 = int_to_ptr.vmem [resolvable:$false] %s1406_s13 }
 0x697   : > { %s1408_s14 = scalar_lea.vmem %s1407_s13, 256 }
 0x699   : > { %824 = vrot.lane.b32.xlu1 %v1631_v24, %s1477_s6  ;;  %s188_s6 = scalar_lea.vmem [#allocation2], %s1155_s30 }
 0x69d   : > { %822 = vrot.lane.b32.xlu1 %v1631_v24, %s1478_s7  ;;  %s1092_s7 = sshll.u32 %s188_s6, 4  ;;  %s1714_s7 = int_to_ptr.vmem [resolvable:$true] %s1092_s7 }
 0x69e   : > { %s1402_s12 = scalar_lea.vmem %s1714_s7, 128  ;;  %p1409_p0 = scmp.lt.s32.totalorder %s1714_s7, %s1407_s13 }
 0x69f   : > { %p1403_p11 = scmp.ne.s32.totalorder %s1714_s7, %s1402_s12  ;;  %p1410_p1 = scmp.lt.s32.totalorder %s1408_s14, %s1402_s12 }
 0x6a1   : > { %p1404_p12 = pnand %p1403_p11, %p1547_p5  ;;  %p1411_p2 = por %p1410_p1, %p1409_p0 }
 0x6a3   : > { %p1405_p13 = pneg %p1404_p12 }
 0x6a5   : > { %p1412_p3 = pnand %p1411_p2, %p1405_p13 }
 0x711   : > { %v737_v62 = vpop.xlane.xlu1 %736 }
 0x712   : > { %v738_v63 = vsub.f32 %v731_v59, %v737_v62 }
 0x714   : > { %v739_v0 = vmul.f32 1.442695, %v738_v63 }
 0x715   : > { %v747_v1 = vpop.permute.xlu1 %746 }
 0x716   : > { %1394 = vpow2.f32 %v739_v0  ;;  %1275 = vmatpush3.msra.mxu1 %v747_v1 }
 0x717   : > { %1279 = vmatprep.subr.mxu1 %v1468_v5 }
 0x719   : > { %v825_v8 = vpop.permute.xlu1 %824 }
 0x71d   : > { %v823_v10 = vpop.permute.xlu1 %822 }
 0x720   : > { %v1395_v3 = vpop.eup %1394 }
 0x721   : > { %v741_v4 = vsel %vm330_vm3, %v1395_v3, 0.0 }
 0x722   : > { %742 = vadd.xlane.f32.xlu0 %v741_v4 }
 0x7af   : > { %v743_v6 = vpop.xlane.xlu0 %742 }
 0x7b0   : > { %1396 = vrcp.f32 %v743_v6 }
 0x7ba   : > { %v1397_v7 = vpop.eup %1396 }
 0x7bb   : > { %v745_v9 = vmul.f32 %v1397_v7, %v1395_v3 }
 0x7bd   : > { %1277 = vmatmul.mubr.msk.f32.vlgmr.msra.gmra.mrb[10].mxu1 %vm330_vm3, %v745_v9 }
 0x7be   : > { %1280 = vmatpush3.xpose.msk.msra.mxu1 %vm330_vm3, %v825_v8  ;;  %1281 = vmatprep.mubr.msk.f32.mxu1 %vm1467_vm2, %v1468_v5 }
 0x7bf   : > { %1284 = vmatprep.subr.mxu1 %v1468_v5 }
 0x7c1   : > { %1282 = vmatmul.mubr.msk.f32.vlgmr.msra.gmra.mrb[12].mxu1 %vm330_vm3, %v823_v10 }
 0x7c2   : > { %1286 = vmatprep.mubr.msk.f32.mxu1 %vm1467_vm2, %v1468_v5 }
 0x890   : > { %v818_v11 = vpop.f32.mrb[10].mxu1 }
 0x891   : > { %v1278_v12 = vpop.f32.mrb[11].mxu1 }
 0x894   : > { %v896_v13 = vpop.f32.mrb[12].mxu1 }
 0x895   : > { %v1283_v14 = vpop.f32.mrb[13].mxu1  ;;  %v900_v15 = vsel %vm330_vm3, %v896_v13, -inf }
 0x896   : > { %901 = vmax.xlane.f32.xlu1 %v900_v15 }
 0x923   : > { %v902_v16 = vpop.xlane.xlu1 %901 }
 0x924   : > { %v903_v17 = vsub.f32 %v896_v13, %v902_v16 }
 0x926   : > { %v904_v18 = vmul.f32 1.442695, %v903_v17 }
 0x928   : > { %1398 = vpow2.f32 %v904_v18 }
 0x932   : > { %v1399_v19 = vpop.eup %1398 }
 0x933   : > { %v906_v20 = vsel %vm330_vm3, %v1399_v19, 0.0 }
 0x934   : > { %907 = vadd.xlane.f32.xlu0 %v906_v20 }
 0x94a   : > { %911 = vrot.lane.b32.xlu0 %v1631_v24, %s1479_s8  ;;  %v323_v24 = vld [vmem:[%s1758_s3] sm:$0xff] }
 0x94b   : > { %v1325_v28 = vpack.c.bf16 %v324_v26, %v323_v24 }
 0x94e   : > { %988 = vrot.lane.b32.xlu0 %v653_v57, %s1480_s9 }
 0x952   : > { %992 = vrot.lane.b32.xlu0 %v818_v11, %s1481_s10  ;;  %s1712_s10 = scalar_lea.hbm %s1759_s4, %s1185_s5 }
 0x9c1   : > { %v908_v21 = vpop.xlane.xlu0 %907 }
 0x9c2   : > { %1400 = vrcp.f32 %v908_v21 }
 0x9c5   : > { %v912_v22 = vpop.permute.xlu0 %911 }
 0x9c6   : > { %1285 = vmatpush3.msra.mxu1 %v912_v22 }
 0x9c7   : > { %1324 = vmatprep.subr.bf16.mxu1 %v1466_v2 }
 0x9c9   : > { %v989_v32 = vpop.permute.xlu0 %988 }
 0x9ca   : > { %v999_v34 = vsel %vm330_vm3, %v1657_v42, %v989_v32 }
 0x9cc   : > { %v1401_v23 = vpop.eup %1400 }
 0x9cd   : > { %v910_v25 = vmul.f32 %v1401_v23, %v1399_v19  ;;  %v993_v33 = vpop.permute.xlu0 %992 }
 0x9ce   : > { %v1001_v35 = vsel %vm1000_vm4, %v999_v34, %v993_v33 }
 0x9cf   : > { %1287 = vmatmul.mubr.msk.f32.vlgmr.msra.gmra.mrb[14].mxu1 %vm330_vm3, %v910_v25 }
 0x9d0   : > { %1297 = vmatprep.mubr.msk.f32.mxu1 %vm1467_vm2, %v1468_v5  ;;  %1326 = vmatpush3.bf16.msra.mxu1 %v1325_v28 }
 0x9d1   : > { %1327 = vmatprep.subr.bf16.mxu1 %v1466_v2 }
 0x9d4   : > { %1329 = vmatpush3.bf16.msra.mxu1 %v1328_v30 }
 0xaa2   : > { %v983_v5 = vpop.f32.mrb[14].mxu1 }
 0xaa3   : > { %996 = vrot.lane.b32.xlu1 %v983_v5, %s1482_s28  ;;  %v1288_v31 = vpop.f32.mrb[15].mxu1 }
 0xb15   : > { %v997_v36 = vpop.permute.xlu1 %996 }
 0xb16   : > { %v1003_v37 = vsel %vm1002_vm5, %v1001_v35, %v997_v36 }
 0xb17   : > { %1298 = vmatmul.mubr.msk.f32.vlgmr.msra.gmra.mrb[16].mxu1 %vm213_vm0, %v1003_v37 }
 0xbea   : > { %v1073_v2 = vpop.f32.mrb[16].mxu1 }
 0xbeb   : > { %1077 = vst.msk [vmem:[%s188_s6] sm:$0xff] %vm213_vm0, %v1073_v2  ;;  %v1299_v38 = vpop.f32.mrb[17].mxu1 }
 0xbec   : > { %1415 = shalt.err (!%p1412_p3)
}
 0xbed   : > { %s1416_s20 = scalar_lea.hbm %s1712_s10, 128  ;;  %s1420_s27 = scalar_lea.hbm %s1759_s4, 256 }
 0xbee   : > { %p1417_p4 = scmp.ne.s32.totalorder %s1712_s10, %s1416_s20  ;;  %p1421_p9 = scmp.lt.u32.totalorder %s1712_s10, %s1759_s4 }
 0xbef   : > { %p1422_p10 = scmp.lt.u32.totalorder %s1420_s27, %s1416_s20  ;;  %p1424_p12 = scmp.lt.u32.totalorder %s1416_s20, %s1712_s10 }
 0xbf0   : > { %p1418_p7 = pnand %p1417_p4, %p1547_p5 }
 0xbf1   : > { %p1423_p11 = por %p1422_p10, %p1421_p9 }
 0xbf2   : > { %p1419_p8 = pneg %p1418_p7 }
 0xbf3   : > { %p1425_p13 = por %p1424_p12, %p1423_p11 }
 0xbf5   : > { %p1426_p0 = pnand %p1425_p13, %p1419_p8 }
 0xbf7   : > { %1429 = shalt.err (!%p1426_p0)
}
 0xbf8   : > { %1330 = dma.vmem_to_hbm [thread:$0]  (%p1547_p5), %s1714_s7, 128, %s1712_s10, %s1079_s11  }
 0xbf9 PF: > { %p1336_p1 = scmp.ge.s32.totalorder %s1464_s18, 2  ;;  %s1104_s30 = sand.u32 1, %s1452_s15  }
 0xbfa   : > { %s1105_s5 = scalar_lea.sflag [#allocation3], %s1104_s30 }
 0xbfb   : > { %p1333_p2 = pnand %p1336_p1, %p1551_p6 }
 0xbfd   : > { %1447 = dma.done.wait (!%p1333_p2), %s1105_s5, 128  }
 0xbfe   : > { %1449 = vsyncadd (!%p1333_p2), %s1105_s5, 4294967168  ;;  %p14_p3 = scmp.ge.s32.totalorder %s1534_s21, 4   ;;  %s1764_s15 = smov %s1456_s16 }
 0xbff   : > { %s1765_s16 = smov %s1460_s17  ;;  %s1766_s17 = smov %s1545_s24 }
 0xc00   : > { %s1767_s18 = smov %s1534_s21  ;;  %16 = sbr.rel (!%p14_p3) target bundleno = 3 (0x3), region = 71 }
 0xc07   :  { %1110 = vsyncpa [#allocation3], 1 }
 0xc08   :  { %1112 = vsyncpa [#allocation3 + $0x1], 1 }

</bundles_post_ra>
